<compile_context>
chip_gen: v7x
topology: tpu7x:2x2x1
jax: 0.10.0
libtpu: 0.0.40
codegen_flags: <defaults>
</compile_context>

<pallas_src>
import jax
import jax.numpy as jnp
from jax.experimental import pallas as pl
from jax.experimental.pallas import tpu as pltpu

_LANE = 128


def _tversky_partial_kernel(p_ref, t_ref, o_ref):
    """Accumulate per-lane partials of sum(p), sum(t), sum(p*t).

    Grid = (splits, steps).  o_ref is the (1, 3, 128) accumulator block for
    the current split; it stays VMEM-resident across the 'steps' axis.
    """
    @pl.when(pl.program_id(1) == 0)
    def _():
        o_ref[...] = jnp.zeros_like(o_ref)

    p = p_ref[...].astype(jnp.float32)
    t = t_ref[...].astype(jnp.float32)

    # No masking: the grid only visits complete blocks.
    o_ref[0, 0:1, :] += jnp.sum(p, axis=0, keepdims=True)
    o_ref[0, 1:2, :] += jnp.sum(t, axis=0, keepdims=True)
    o_ref[0, 2:3, :] += jnp.sum(p * t, axis=0, keepdims=True)


def _tpu_generation():
    try:
        kind = jax.devices()[0].device_kind.lower()
    except Exception:  # pragma: no cover - CPU / interpret fallback
        return "unknown"
    if "v7" in kind:
        return "v7x"
    if "v6" in kind:
        return "v6e"
    if "v5p" in kind:
        return "v5p"
    if "v5" in kind:
        return "v5e"
    return "unknown"


# generation -> (block_rows, num_splits, vmem_limit_bytes)
_GEN_POLICY = {
    "v7x": (8192, 2, 48 * 1024 * 1024),
    "v6e": (8192, 1, 48 * 1024 * 1024),
    "v5p": (8192, 1, 48 * 1024 * 1024),
    "v5e": (4096, 1, 32 * 1024 * 1024),
    "unknown": (4096, 1, 32 * 1024 * 1024),
}


def binary_tversky_focal_loss(predict, target, *, smooth=1.0, alpha=0.7,
                              gamma=1.33, block_rows=None, num_splits=None,
                              vmem_limit_bytes=None):
    assert predict.shape == target.shape, 'predict & target shapes do not match.'

    gen = _tpu_generation()
    d_rows, d_splits, d_vmem = _GEN_POLICY[gen]
    block_rows = d_rows if block_rows is None else block_rows
    num_splits = d_splits if num_splits is None else num_splits
    vmem_limit_bytes = d_vmem if vmem_limit_bytes is None else vmem_limit_bytes

    p_flat = predict.reshape(-1)
    t_flat = target.reshape(-1)
    n = p_flat.shape[0]
    rows = n // _LANE                       # complete 128-lane rows

    sum_p = jnp.float32(0.0)
    sum_t = jnp.float32(0.0)
    tp = jnp.float32(0.0)
    kernel_elems = 0                         # elements covered by the kernel

    if rows > 0:
        if n % _LANE == 0:
            # Free bitcast reshape, no HBM copy.
            p2 = p_flat.reshape(rows, _LANE)
            t2 = t_flat.reshape(rows, _LANE)
        else:
            # TODO(synk): the prefix slice may materialize one copy for ragged
            # n; a fully copy-free path would need a 1-D BlockSpec over the
            # raw flat stream.
            p2 = p_flat[: rows * _LANE].reshape(rows, _LANE)
            t2 = t_flat[: rows * _LANE].reshape(rows, _LANE)

        if rows <= block_rows:
            block_rows_eff = rows            # single full-extent block
        else:
            # 16-row alignment covers bf16 (16,128) packing as well as f32's 8.
            assert block_rows % 16 == 0, "block_rows must be a multiple of 16"
            block_rows_eff = block_rows

        full_blocks = rows // block_rows_eff
        splits = max(1, min(num_splits, full_blocks))
        steps = full_blocks // splits        # only complete blocks per split
        kernel_rows = splits * steps * block_rows_eff
        kernel_elems = kernel_rows * _LANE

        def in_map(s, j):
            return (s * steps + j, 0)

        def run(dim0_sem):
            return pl.pallas_call(
                _tversky_partial_kernel,
                out_shape=jax.ShapeDtypeStruct((splits, 3, _LANE), jnp.float32),
                grid_spec=pltpu.PrefetchScalarGridSpec(
                    num_scalar_prefetch=0,
                    grid=(splits, steps),
                    in_specs=[
                        pl.BlockSpec((block_rows_eff, _LANE), in_map),
                        pl.BlockSpec((block_rows_eff, _LANE), in_map),
                    ],
                    out_specs=pl.BlockSpec((1, 3, _LANE),
                                           lambda s, j: (s, 0, 0)),
                ),
                compiler_params=pltpu.CompilerParams(
                    dimension_semantics=(dim0_sem, "arbitrary"),
                    vmem_limit_bytes=vmem_limit_bytes),
            )(p2, t2)

        if gen == "v7x" and splits > 1:
            # Explicitly shard the split axis across the two TensorCores.
            try:
                partials = run(pltpu.CORE_PARALLEL)
            except Exception:
                partials = run("parallel")
        else:
            partials = run("parallel")

        sums = jnp.sum(partials, axis=(0, 2))          # (3,)
        sum_p, sum_t, tp = sums[0], sums[1], sums[2]

    if kernel_elems < n:
        # Ragged tail (leftover blocks / rows plus the sub-128 lane tail):
        # tiny fused jnp reduction folded into the epilogue — no pad copy.
        pt = p_flat[kernel_elems:].astype(jnp.float32)
        tt = t_flat[kernel_elems:].astype(jnp.float32)
        sum_p = sum_p + jnp.sum(pt)
        sum_t = sum_t + jnp.sum(tt)
        tp = tp + jnp.sum(pt * tt)

    beta = 1.0 - alpha
    fn = sum_t - tp                                    # sum((1 - p) * t)
    fp = sum_p - tp                                    # sum(p * (1 - t))
    num = tp + smooth
    den = tp + alpha * fn + beta * fp + smooth
    return jnp.power(1.0 - num / den, 1.0 / gamma)


def _reference_loss(predict, target, smooth=1.0, alpha=0.7, gamma=1.33):
    beta = 1.0 - alpha
    p = predict.reshape(-1).astype(jnp.float32)
    t = target.reshape(-1).astype(jnp.float32)
    num = jnp.sum(p * t) + smooth
    den = (jnp.sum(p * t) + alpha * jnp.sum((1.0 - p) * t)
           + beta * jnp.sum(p * (1.0 - t)) + smooth)
    return jnp.power(1.0 - num / den, 1.0 / gamma)


if __name__ == "__main__":
    key = jax.random.PRNGKey(0)
    k1, k2 = jax.random.split(key)

    # NCHW logits through a sigmoid, binary target mask.
    shape = (2, 4, 16, 16)
    predict = jax.nn.sigmoid(jax.random.normal(k1, shape, dtype=jnp.float32))
    target = (jax.random.uniform(k2, shape) > 0.5).astype(jnp.float32)

    loss = binary_tversky_focal_loss(predict, target)
    loss = jax.block_until_ready(loss)

    ref = _reference_loss(predict, target)
    assert jnp.allclose(loss, ref, atol=1e-5, rtol=1e-5), (loss, ref)

    print("KERNEL_OK")
</pallas_src>

<mosaic_0001>
module attributes {stable_mosaic.version = 11 : i64} {
  func.func @_tversky_partial_kernel(%arg0: i32, %arg1: i32, %arg2: memref<16x128xf32, #tpu.memory_space<vmem>>, %arg3: memref<16x128xf32, #tpu.memory_space<vmem>>, %arg4: memref<1x3x128xf32, #tpu.memory_space<vmem>>) attributes {dimension_semantics = [#tpu.dimension_semantics<parallel>, #tpu.dimension_semantics<arbitrary>], iteration_bounds = array<i64: 1, 1>, scalar_prefetch = 0 : i64, scratch_operands = 0 : i64, tpu.core_type = #tpu.core_type<tc>, window_params = [{transform_indices = @transform_0, window_bounds = array<i64: 16, 128>}, {transform_indices = @transform_1, window_bounds = array<i64: 16, 128>}, {transform_indices = @transform_2, window_bounds = array<i64: 1, 3, 128>}]} {
    %c0_i32 = arith.constant 0 : i32
    %0 = arith.cmpi eq, %arg1, %c0_i32 : i32
    %1 = arith.extui %0 : i1 to i32
    %c0_i32_0 = arith.constant 0 : i32
    %2 = arith.cmpi ne, %1, %c0_i32_0 : i32
    scf.if %2 {
      %cst_22 = arith.constant 0.000000e+00 : f32
      %30 = vector.broadcast %cst_22 : f32 to vector<1x3x128xf32>
      %c0_23 = arith.constant 0 : index
      %c0_24 = arith.constant 0 : index
      %c0_25 = arith.constant 0 : index
      %31 = vector.load %arg4[%c0_23, %c0_24, %c0_25] : memref<1x3x128xf32, #tpu.memory_space<vmem>>, vector<1x3x128xf32>
      tpu.vector_store %arg4[%c0_23, %c0_24, %c0_25], %30 {strides = array<i32>} : memref<1x3x128xf32, #tpu.memory_space<vmem>>, vector<1x3x128xf32>,
    } else {
    }
    %c0 = arith.constant 0 : index
    %c0_1 = arith.constant 0 : index
    %3 = vector.load %arg2[%c0, %c0_1] : memref<16x128xf32, #tpu.memory_space<vmem>>, vector<16x128xf32>
    %c0_2 = arith.constant 0 : index
    %c0_3 = arith.constant 0 : index
    %4 = vector.load %arg3[%c0_2, %c0_3] : memref<16x128xf32, #tpu.memory_space<vmem>>, vector<16x128xf32>
    %c0_4 = arith.constant 0 : index
    %c0_5 = arith.constant 0 : index
    %c0_6 = arith.constant 0 : index
    %5 = vector.load %arg4[%c0_4, %c0_5, %c0_6] : memref<1x3x128xf32, #tpu.memory_space<vmem>>, vector<1x1x128xf32>
    %6 = vector.shape_cast %5 : vector<1x1x128xf32> to vector<1x128xf32>
    %cst = arith.constant dense<0.000000e+00> : vector<128xf32>
    %7 = vector.multi_reduction <add>, %3, %cst [0] : vector<16x128xf32> to vector<128xf32>
    %8 = vector.shape_cast %7 : vector<128xf32> to vector<1x128xf32>
    %9 = arith.addf %6, %8 : vector<1x128xf32>
    %c0_7 = arith.constant 0 : index
    %c0_8 = arith.constant 0 : index
    %c0_9 = arith.constant 0 : index
    %10 = vector.load %arg4[%c0_7, %c0_8, %c0_9] : memref<1x3x128xf32, #tpu.memory_space<vmem>>, vector<1x1x128xf32>
    %11 = vector.shape_cast %10 : vector<1x1x128xf32> to vector<1x128xf32>
    %12 = vector.shape_cast %9 : vector<1x128xf32> to vector<1x1x128xf32>
    tpu.vector_store %arg4[%c0_7, %c0_8, %c0_9], %12 {strides = array<i32>} : memref<1x3x128xf32, #tpu.memory_space<vmem>>, vector<1x1x128xf32>,
    %c0_10 = arith.constant 0 : index
    %c1 = arith.constant 1 : index
    %c0_11 = arith.constant 0 : index
    %13 = vector.load %arg4[%c0_10, %c1, %c0_11] : memref<1x3x128xf32, #tpu.memory_space<vmem>>, vector<1x1x128xf32>
    %14 = vector.shape_cast %13 : vector<1x1x128xf32> to vector<1x128xf32>
    %cst_12 = arith.constant dense<0.000000e+00> : vector<128xf32>
    %15 = vector.multi_reduction <add>, %4, %cst_12 [0] : vector<16x128xf32> to vector<128xf32>
    %16 = vector.shape_cast %15 : vector<128xf32> to vector<1x128xf32>
    %17 = arith.addf %14, %16 : vector<1x128xf32>
    %c0_13 = arith.constant 0 : index
    %c1_14 = arith.constant 1 : index
    %c0_15 = arith.constant 0 : index
    %18 = vector.load %arg4[%c0_13, %c1_14, %c0_15] : memref<1x3x128xf32, #tpu.memory_space<vmem>>, vector<1x1x128xf32>
    %19 = vector.shape_cast %18 : vector<1x1x128xf32> to vector<1x128xf32>
    %20 = vector.shape_cast %17 : vector<1x128xf32> to vector<1x1x128xf32>
    tpu.vector_store %arg4[%c0_13, %c1_14, %c0_15], %20 {strides = array<i32>} : memref<1x3x128xf32, #tpu.memory_space<vmem>>, vector<1x1x128xf32>,
    %c0_16 = arith.constant 0 : index
    %c2 = arith.constant 2 : index
    %c0_17 = arith.constant 0 : index
    %21 = vector.load %arg4[%c0_16, %c2, %c0_17] : memref<1x3x128xf32, #tpu.memory_space<vmem>>, vector<1x1x128xf32>
    %22 = vector.shape_cast %21 : vector<1x1x128xf32> to vector<1x128xf32>
    %23 = arith.mulf %3, %4 : vector<16x128xf32>
    %cst_18 = arith.constant dense<0.000000e+00> : vector<128xf32>
    %24 = vector.multi_reduction <add>, %23, %cst_18 [0] : vector<16x128xf32> to vector<128xf32>
    %25 = vector.shape_cast %24 : vector<128xf32> to vector<1x128xf32>
    %26 = arith.addf %22, %25 : vector<1x128xf32>
    %c0_19 = arith.constant 0 : index
    %c2_20 = arith.constant 2 : index
    %c0_21 = arith.constant 0 : index
    %27 = vector.load %arg4[%c0_19, %c2_20, %c0_21] : memref<1x3x128xf32, #tpu.memory_space<vmem>>, vector<1x1x128xf32>
    %28 = vector.shape_cast %27 : vector<1x1x128xf32> to vector<1x128xf32>
    %29 = vector.shape_cast %26 : vector<1x128xf32> to vector<1x1x128xf32>
    tpu.vector_store %arg4[%c0_19, %c2_20, %c0_21], %29 {strides = array<i32>} : memref<1x3x128xf32, #tpu.memory_space<vmem>>, vector<1x1x128xf32>,
    return
  }
  func.func @transform_0(%arg0: i32, %arg1: i32) -> (i32, i32) {
    %c1_i32 = arith.constant 1 : i32
    %0 = arith.muli %arg0, %c1_i32 : i32
    %1 = arith.addi %0, %arg1 : i32
    %c0_i32 = arith.constant 0 : i32
    %c0_i32_0 = arith.constant 0 : i32
    return %1, %c0_i32 : i32, i32
  }
  func.func @transform_1(%arg0: i32, %arg1: i32) -> (i32, i32) {
    %c1_i32 = arith.constant 1 : i32
    %0 = arith.muli %arg0, %c1_i32 : i32
    %1 = arith.addi %0, %arg1 : i32
    %c0_i32 = arith.constant 0 : i32
    %c0_i32_0 = arith.constant 0 : i32
    return %1, %c0_i32 : i32, i32
  }
  func.func @transform_2(%arg0: i32, %arg1: i32) -> (i32, i32, i32) {
    %c0_i32 = arith.constant 0 : i32
    %c0_i32_0 = arith.constant 0 : i32
    %c0_i32_1 = arith.constant 0 : i32
    return %arg0, %c0_i32, %c0_i32_0 : i32, i32, i32
  }
}

</mosaic_0001>

<bundles_post_ra>
// kernel: tpu_custom_call.1
= control target key start
LH: loop header
LB: loop body
LE: loop exit
PB: predicated region body
PF: predicated region fallthrough
CT: control target
= control target key end

     0   :  { %7 = vsyncpa [#allocation3], 0  ;;  %s216_s0 = inlined_call_operand.hbm [shape: f32[16,128], index: 0, kind: input, shape index: {}]   ;;  %s217_s1 = inlined_call_operand.hbm [shape: f32[16,128], index: 1, kind: input, shape index: {}]   ;;  %s218_s2 = inlined_call_operand.vmem [shape: f32[1,3,128], index: 2, kind: output, shape index: {}]  }
   0x1   :  { %8 = vsyncpa [#allocation5], 0  ;;  %s151_s9 = smov [#allocation2]   ;;  %s103_s13 = scalar_lea.hbm %s216_s0, 256 }
   0x2   :  { %s18_s10 = sshll.u32 %s151_s9, 4  ;;  %p104_p0 = scmp.ne.s32.totalorder %s216_s0, %s103_s13  ;;  %s19_s10 = int_to_ptr.vmem [resolvable:$true] %s18_s10 }
   0x3   :  { %p107_p1 = scmp.lt.u32.totalorder %s103_s13, %s216_s0 }
   0x5   :  { %p109_p2 = pnand %p107_p1, %p104_p0 }
   0x7   :  { %112 = shalt.err (!%p109_p2)
}
   0x8   :  { %s113_s18 = scalar_lea.vmem %s19_s10, 256  ;;  %p118_p4 = scmp.lt.s32.totalorder %s19_s10, %s19_s10 }
   0x9   :  { %p114_p3 = scmp.ne.s32.totalorder %s19_s10, %s113_s18  ;;  %p119_p5 = scmp.lt.s32.totalorder %s113_s18, %s113_s18 }
   0xb   :  { %p120_p6 = por %p119_p5, %p118_p4 }
   0xd   :  { %p121_p7 = pnand %p120_p6, %p114_p3 }
   0xf   :  { %124 = shalt.err (!%p121_p7)
}
  0x10   :  { %s152_s19 = smov 128   ;;  %s153_s20 = smov 8  }
  0x11   :  { %24 = dma.hbm_to_vmem [thread:$0]  %s216_s0, 256, %s19_s10, [#allocation3], %s152_s19, %s152_s19, %s153_s20  }
  0x12   :  { %s154_s23 = smov [#allocation4]   ;;  %s125_s27 = scalar_lea.hbm %s217_s1, 256 }
  0x13   :  { %s34_s24 = sshll.u32 %s154_s23, 4  ;;  %p126_p8 = scmp.ne.s32.totalorder %s217_s1, %s125_s27  ;;  %s35_s24 = int_to_ptr.vmem [resolvable:$true] %s34_s24 }
  0x14   :  { %p129_p9 = scmp.lt.u32.totalorder %s125_s27, %s217_s1 }
  0x16   :  { %p131_p10 = pnand %p129_p9, %p126_p8 }
  0x18   :  { %134 = shalt.err (!%p131_p10)
}
  0x19   :  { %s135_s4 = scalar_lea.vmem %s35_s24, 256  ;;  %p140_p12 = scmp.lt.s32.totalorder %s35_s24, %s35_s24 }
  0x1a   :  { %p136_p11 = scmp.ne.s32.totalorder %s35_s24, %s135_s4  ;;  %p141_p13 = scmp.lt.s32.totalorder %s135_s4, %s135_s4 }
  0x1c   :  { %p142_p0 = por %p141_p13, %p140_p12 }
  0x1e   :  { %p143_p1 = pnand %p142_p0, %p136_p11 }
  0x20   :  { %146 = shalt.err (!%p143_p1)
}
  0x21   :  { %40 = dma.hbm_to_vmem [thread:$0]  %s217_s1, 256, %s35_s24, [#allocation5], %s152_s19, %s152_s19, %s153_s20  }
  0x22   :  { %147 = dma.done.wait [#allocation3], 256  }
  0x23   :  { %148 = vsyncadd [#allocation3], 4294967040 }
  0x24   :  { %149 = dma.done.wait [#allocation5], 256  }
  0x25   :  { %150 = vsyncadd [#allocation5], 4294967040  ;;  %v155_v0 = vmov 0.0   ;;  %v56_v1 = vld [vmem:[#allocation2] sm:$0xff]  ;;  %v57_v2 = vld [vmem:[#allocation2 + $0x8] sm:$0xff] }
  0x26   :  { %55 = vst [vmem:[%s218_s2] sm:$0x7] %v155_v0  ;;  %v58_v3 = vld [vmem:[#allocation4] sm:$0xff]  ;;  %v61_v4 = vadd.f32 %v57_v2, %v56_v1  ;;  %v59_v5 = vld [vmem:[#allocation4 + $0x8] sm:$0xff] }
  0x27   :  { %v81_v6 = vmul.f32 %v58_v3, %v56_v1  ;;  %v71_v7 = vadd.f32 %v59_v5, %v58_v3  ;;  %v82_v8 = vmul.f32 %v59_v5, %v57_v2 }
  0x28   :  { %v62_v9 = vrot.slane %v61_v4, 4 }
  0x29   :  { %v72_v10 = vrot.slane %v71_v7, 4  ;;  %v83_v11 = vadd.f32 %v82_v8, %v81_v6 }
  0x2a   :  { %v63_v12 = vadd.f32 %v62_v9, %v61_v4 }
  0x2b   :  { %v73_v13 = vadd.f32 %v72_v10, %v71_v7  ;;  %v84_v14 = vrot.slane %v83_v11, 4 }
  0x2c   :  { %v64_v15 = vrot.slane %v63_v12, 2 }
  0x2d   :  { %v74_v16 = vrot.slane %v73_v13, 2  ;;  %v85_v17 = vadd.f32 %v84_v14, %v83_v11  ;;  %v60_v22 = vld [vmem:[%s218_s2] sm:$0x1]  ;;  %v70_v26 = vld [vmem:[%s218_s2 + $0x1] sm:$0x1] }
  0x2e   :  { %v65_v18 = vadd.f32 %v64_v15, %v63_v12  ;;  %v80_v30 = vld [vmem:[%s218_s2 + $0x2] sm:$0x1] }
  0x2f   :  { %v75_v19 = vadd.f32 %v74_v16, %v73_v13  ;;  %v86_v20 = vrot.slane %v85_v17, 2 }
  0x30   :  { %v66_v21 = vrot.slane %v65_v18, 1 }
  0x31   :  { %v76_v23 = vrot.slane %v75_v19, 1  ;;  %v87_v24 = vadd.f32 %v86_v20, %v85_v17 }
  0x32   :  { %v67_v25 = vadd.f32 %v66_v21, %v65_v18 }
  0x33   :  { %v77_v27 = vadd.f32 %v76_v23, %v75_v19  ;;  %v88_v28 = vrot.slane %v87_v24, 1 }
  0x34   :  { %v68_v29 = vadd.f32 %v67_v25, %v60_v22 }
  0x35   :  { %v78_v31 = vadd.f32 %v77_v27, %v70_v26  ;;  %v89_v32 = vadd.f32 %v88_v28, %v87_v24 }
  0x36   :  { %69 = vst [vmem:[%s218_s2] sm:$0x1] %v68_v29 }
  0x37   :  { %79 = vst [vmem:[%s218_s2 + $0x1] sm:$0x1] %v78_v31  ;;  %v90_v33 = vadd.f32 %v89_v32, %v80_v30 }
  0x39   :  { %91 = vst [vmem:[%s218_s2 + $0x2] sm:$0x1] %v90_v33 }
  0x3a   :  { %96 = vsyncpa [#allocation3], 1 }
  0x3b   :  { %97 = vsyncpa [#allocation5], 1 }

</bundles_post_ra>
